<compile_context>
chip_gen: v6e
topology: v6e:2x2x1
jax: 0.10.0
libtpu: 0.0.40
codegen_flags: <defaults>
</compile_context>

<pallas_src>
import functools

import jax
import jax.numpy as jnp
from jax import lax
from jax.experimental import pallas as pl
from jax.experimental.pallas import tpu as pltpu


def _round_up(v, m):
    return (v + m - 1) // m * m


def _mlp_kernel(x_ref, w1t_ref, b1_ref, w2t_ref, b2_ref, o_ref, *, compute_dtype):
    # x_ref:   (tm, Din)      w1t_ref: (Din, Dmid)   b1_ref: (1, Dmid)  f32
    # w2t_ref: (Dmid, Dout)   b2_ref:  (1, Dout) f32 o_ref:  (tm, Dout)
    x = x_ref[...].astype(compute_dtype)       # in-vreg cast (no wrapper HBM pass)
    # x @ W1^T  -> canonical (m,k)x(k,n) contraction on the MXU, f32 accumulate.
    h = jnp.dot(x, w1t_ref[...], preferred_element_type=jnp.float32)
    # Bias add + ReLU on the f32 accumulator (VPU; v5e has no bf16 VPU path).
    h = jnp.maximum(h + b1_ref[...], 0.0)
    # ReLU(h) @ W2^T ; LHS fed to the MXU in the compute dtype.
    out = jnp.dot(h.astype(compute_dtype), w2t_ref[...],
                  preferred_element_type=jnp.float32)
    o_ref[...] = (out + b2_ref[...]).astype(o_ref.dtype)


def jsc_encoder_forward(x, w1, b1, w2, b2, *, tm_max=4096, compute_dtype=None):
    """Fused Linear -> ReLU -> Linear (JSC_Encoder.forward).

    x:  [..., Din]                 (any float dtype; ints are promoted to f32)
    w1: [Dmid, Din], b1: [Dmid]    (native PyTorch nn.Linear layout)
    w2: [Dout, Dmid], b2: [Dout]
    compute_dtype: dtype fed to the MXU.  None => x.dtype (faithful to the f32
      PyTorch module).  Pass jnp.bfloat16 to trade precision for throughput.
    """
    orig_shape = x.shape
    din = orig_shape[-1]
    dmid, dout = w1.shape[0], w2.shape[0]

    x_dtype = jnp.dtype(x.dtype)
    if not jnp.issubdtype(x_dtype, jnp.floating):
        x = x.astype(jnp.float32)
        x_dtype = jnp.dtype(jnp.float32)
    cdt = jnp.dtype(compute_dtype) if compute_dtype is not None else x_dtype
    out_dtype = x_dtype

    x2d = x.reshape(-1, din)
    m = x2d.shape[0]

    # Row tile: aim for >= 8 grid steps on large inputs (feeds both v7x TCs via
    # the 'parallel' axis and keeps the pipeline busy), amortize the per-step
    # overhead, and cap at tm_max so VMEM stays safe on v5e's 16 MiB default.
    row_align = 16 if x_dtype.itemsize == 2 else 8
    tm = _round_up(max(pl.cdiv(m, 8), 1), row_align)
    tm = min(tm, _round_up(tm_max, row_align))
    grid_m = pl.cdiv(m, tm)                    # ragged tail handled in-kernel

    # One-time prep of the tiny resident operands (KB-scale): cast to the
    # compute dtype and pre-transpose so both dots are canonical (m,k)x(k,n).
    w1t = jnp.transpose(w1).astype(cdt)        # (Din, Dmid)
    w2t = jnp.transpose(w2).astype(cdt)        # (Dmid, Dout)
    b1r = b1.reshape(1, dmid).astype(jnp.float32)
    b2r = b2.reshape(1, dout).astype(jnp.float32)

    cost = pl.CostEstimate(
        flops=2 * m * (din * dmid + dmid * dout),
        transcendentals=0,
        bytes_accessed=(m * din * x_dtype.itemsize                 # x stream
                        + (din * dmid + dmid * dout) * cdt.itemsize  # weights
                        + (dmid + dout) * 4                          # biases
                        + m * dout * out_dtype.itemsize),            # out stream
    )

    kernel = functools.partial(_mlp_kernel, compute_dtype=cdt)

    out = pl.pallas_call(
        kernel,
        out_shape=jax.ShapeDtypeStruct((m, dout), out_dtype),
        grid_spec=pltpu.PrefetchScalarGridSpec(
            num_scalar_prefetch=0,
            grid=(grid_m,),
            in_specs=[
                pl.BlockSpec((tm, din), lambda i: (i, 0)),      # x row tile
                pl.BlockSpec((din, dmid), lambda i: (0, 0)),    # W1^T (resident)
                pl.BlockSpec((1, dmid), lambda i: (0, 0)),      # b1  (resident)
                pl.BlockSpec((dmid, dout), lambda i: (0, 0)),   # W2^T (resident)
                pl.BlockSpec((1, dout), lambda i: (0, 0)),      # b2  (resident)
            ],
            out_specs=pl.BlockSpec((tm, dout), lambda i: (i, 0)),
        ),
        compiler_params=pltpu.CompilerParams(
            dimension_semantics=("parallel",)),
        cost_estimate=cost,
    )(x2d, w1t, b1r, w2t, b2r)

    return out.reshape(*orig_shape[:-1], dout)


def _init_params(key, in_features_dim, intermediate_dim, out_features_dim):
    """Deterministic init mimicking nn.Linear's uniform(-1/sqrt(fan_in), ...)."""
    k1, k2, k3, k4 = jax.random.split(key, 4)
    bound1 = 1.0 / jnp.sqrt(in_features_dim)
    bound2 = 1.0 / jnp.sqrt(intermediate_dim)
    w1 = jax.random.uniform(k1, (intermediate_dim, in_features_dim),
                            jnp.float32, -bound1, bound1)
    b1 = jax.random.uniform(k2, (intermediate_dim,), jnp.float32, -bound1, bound1)
    w2 = jax.random.uniform(k3, (out_features_dim, intermediate_dim),
                            jnp.float32, -bound2, bound2)
    b2 = jax.random.uniform(k4, (out_features_dim,), jnp.float32, -bound2, bound2)
    return w1, b1, w2, b2


def _reference(x, w1, b1, w2, b2):
    """Pure-JAX reference with PyTorch nn.Linear conventions."""
    h = jnp.maximum(
        jnp.einsum("...d,md->...m", x, w1, precision=lax.Precision.HIGHEST) + b1,
        0.0)
    return jnp.einsum("...m,om->...o", h, w2,
                      precision=lax.Precision.HIGHEST) + b2


if __name__ == "__main__":
    key = jax.random.PRNGKey(0)
    kx, kp, kr = jax.random.split(key, 3)

    # Small shapes: batch=2, seq=8, in=32, intermediate=64, out=16
    B, S = 2, 8
    in_features_dim, intermediate_dim, out_features_dim = 32, 64, 16

    x = jax.random.normal(kx, (B, S, in_features_dim), jnp.float32)
    w1, b1, w2, b2 = _init_params(kp, in_features_dim, intermediate_dim,
                                  out_features_dim)

    # --- default (f32-faithful) path against the PyTorch-convention reference ---
    out = jax.block_until_ready(jsc_encoder_forward(x, w1, b1, w2, b2))
    ref = _reference(x, w1, b1, w2, b2)
    assert out.shape == (B, S, out_features_dim)
    assert jnp.allclose(out, ref, atol=1e-3, rtol=1e-3)

    # --- ragged row count (m=15 not divisible by the row tile) ---
    x_r = jax.random.normal(kr, (3, 5, in_features_dim), jnp.float32)
    out_r = jax.block_until_ready(jsc_encoder_forward(x_r, w1, b1, w2, b2))
    ref_r = _reference(x_r, w1, b1, w2, b2)
    assert out_r.shape == (3, 5, out_features_dim)
    assert jnp.allclose(out_r, ref_r, atol=1e-3, rtol=1e-3)

    # --- opt-in bf16 streaming path, checked against a bf16-rounded reference ---
    out_bf = jax.block_until_ready(
        jsc_encoder_forward(x, w1, b1, w2, b2, compute_dtype=jnp.bfloat16))
    xb = x.astype(jnp.bfloat16)
    w1b, w2b = w1.astype(jnp.bfloat16), w2.astype(jnp.bfloat16)
    h_b = jnp.maximum(
        jnp.einsum("bsd,md->bsm", xb, w1b,
                   preferred_element_type=jnp.float32) + b1, 0.0)
    ref_b = jnp.einsum("bsm,om->bso", h_b.astype(jnp.bfloat16), w2b,
                       preferred_element_type=jnp.float32) + b2
    assert out_bf.shape == (B, S, out_features_dim)
    assert jnp.allclose(out_bf, ref_b, atol=2e-2, rtol=2e-2)

    print("KERNEL_OK")
</pallas_src>

<mosaic_0001>
module attributes {stable_mosaic.version = 11 : i64} {
  func.func @_mlp_kernel(%arg0: i32, %arg1: memref<8x32xf32, #tpu.memory_space<vmem>>, %arg2: memref<32x64xf32, #tpu.memory_space<vmem>>, %arg3: memref<1x64xf32, #tpu.memory_space<vmem>>, %arg4: memref<64x16xf32, #tpu.memory_space<vmem>>, %arg5: memref<1x16xf32, #tpu.memory_space<vmem>>, %arg6: memref<8x16xf32, #tpu.memory_space<vmem>>) attributes {dimension_semantics = [#tpu.dimension_semantics<parallel>], iteration_bounds = array<i64: 2>, scalar_prefetch = 0 : i64, scratch_operands = 0 : i64, tpu.core_type = #tpu.core_type<tc>, window_params = [{transform_indices = @transform_0, window_bounds = array<i64: 8, 32>}, {pipeline_mode = #tpu.pipeline_mode<synchronous>, transform_indices = @transform_1, window_bounds = array<i64: 32, 64>}, {pipeline_mode = #tpu.pipeline_mode<synchronous>, transform_indices = @transform_2, window_bounds = array<i64: 1, 64>}, {pipeline_mode = #tpu.pipeline_mode<synchronous>, transform_indices = @transform_3, window_bounds = array<i64: 64, 16>}, {pipeline_mode = #tpu.pipeline_mode<synchronous>, transform_indices = @transform_4, window_bounds = array<i64: 1, 16>}, {transform_indices = @transform_5, window_bounds = array<i64: 8, 16>}]} {
    %c0 = arith.constant 0 : index
    %c0_0 = arith.constant 0 : index
    %0 = vector.load %arg1[%c0, %c0_0] : memref<8x32xf32, #tpu.memory_space<vmem>>, vector<8x32xf32>
    %c0_1 = arith.constant 0 : index
    %c0_2 = arith.constant 0 : index
    %1 = vector.load %arg2[%c0_1, %c0_2] : memref<32x64xf32, #tpu.memory_space<vmem>>, vector<32x64xf32>
    %cst = arith.constant dense<0.000000e+00> : vector<8x64xf32>
    %2 = tpu.matmul %0, %1, %cst {dimension_numbers = #tpu.dot_dimension_numbers<[1], [0], [0], [1], [0, 0, 1, 1], [], []>} : vector<8x32xf32>, vector<32x64xf32>, vector<8x64xf32> -> vector<8x64xf32>
    %c0_3 = arith.constant 0 : index
    %c0_4 = arith.constant 0 : index
    %3 = vector.load %arg3[%c0_3, %c0_4] : memref<1x64xf32, #tpu.memory_space<vmem>>, vector<1x64xf32>
    %4 = vector.broadcast %3 : vector<1x64xf32> to vector<8x64xf32>
    %5 = arith.addf %2, %4 : vector<8x64xf32>
    %cst_5 = arith.constant 0.000000e+00 : f32
    %6 = vector.broadcast %cst_5 : f32 to vector<8x64xf32>
    %7 = arith.maximumf %5, %6 : vector<8x64xf32>
    %c0_6 = arith.constant 0 : index
    %c0_7 = arith.constant 0 : index
    %8 = vector.load %arg4[%c0_6, %c0_7] : memref<64x16xf32, #tpu.memory_space<vmem>>, vector<64x16xf32>
    %cst_8 = arith.constant dense<0.000000e+00> : vector<8x16xf32>
    %9 = tpu.matmul %7, %8, %cst_8 {dimension_numbers = #tpu.dot_dimension_numbers<[1], [0], [0], [1], [0, 0, 1, 1], [], []>} : vector<8x64xf32>, vector<64x16xf32>, vector<8x16xf32> -> vector<8x16xf32>
    %c0_9 = arith.constant 0 : index
    %c0_10 = arith.constant 0 : index
    %10 = vector.load %arg5[%c0_9, %c0_10] : memref<1x16xf32, #tpu.memory_space<vmem>>, vector<1x16xf32>
    %11 = vector.broadcast %10 : vector<1x16xf32> to vector<8x16xf32>
    %12 = arith.addf %9, %11 : vector<8x16xf32>
    %c0_11 = arith.constant 0 : index
    %c0_12 = arith.constant 0 : index
    %13 = vector.load %arg6[%c0_11, %c0_12] : memref<8x16xf32, #tpu.memory_space<vmem>>, vector<8x16xf32>
    tpu.vector_store %arg6[%c0_11, %c0_12], %12 {strides = array<i32>} : memref<8x16xf32, #tpu.memory_space<vmem>>, vector<8x16xf32>,
    return
  }
  func.func @transform_0(%arg0: i32) -> (i32, i32) {
    %c0_i32 = arith.constant 0 : i32
    %c0_i32_0 = arith.constant 0 : i32
    return %arg0, %c0_i32 : i32, i32
  }
  func.func @transform_1(%arg0: i32) -> (i32, i32) {
    %c0_i32 = arith.constant 0 : i32
    %c0_i32_0 = arith.constant 0 : i32
    %c0_i32_1 = arith.constant 0 : i32
    return %c0_i32, %c0_i32_0 : i32, i32
  }
  func.func @transform_2(%arg0: i32) -> (i32, i32) {
    %c0_i32 = arith.constant 0 : i32
    %c0_i32_0 = arith.constant 0 : i32
    %c0_i32_1 = arith.constant 0 : i32
    return %c0_i32, %c0_i32_0 : i32, i32
  }
  func.func @transform_3(%arg0: i32) -> (i32, i32) {
    %c0_i32 = arith.constant 0 : i32
    %c0_i32_0 = arith.constant 0 : i32
    %c0_i32_1 = arith.constant 0 : i32
    return %c0_i32, %c0_i32_0 : i32, i32
  }
  func.func @transform_4(%arg0: i32) -> (i32, i32) {
    %c0_i32 = arith.constant 0 : i32
    %c0_i32_0 = arith.constant 0 : i32
    %c0_i32_1 = arith.constant 0 : i32
    return %c0_i32, %c0_i32_0 : i32, i32
  }
  func.func @transform_5(%arg0: i32) -> (i32, i32) {
    %c0_i32 = arith.constant 0 : i32
    %c0_i32_0 = arith.constant 0 : i32
    return %arg0, %c0_i32 : i32, i32
  }
}

</mosaic_0001>

<bundles_post_ra>
// kernel: tpu_custom_call.1
= control target key start
LH: loop header
LB: loop body
LE: loop exit
PB: predicated region body
PF: predicated region fallthrough
CT: control target
= control target key end

     0   :  { %10 = vsyncpa [#allocation3], 0  ;;  %s802_s0 = inlined_call_operand.vmem [shape: f32[16,32], index: 0, kind: input, shape index: {}]   ;;  %s803_s1 = inlined_call_operand.vmem [shape: f32[32,64], index: 1, kind: input, shape index: {}]   ;;  %s804_s2 = inlined_call_operand.vmem [shape: f32[1,64], index: 2, kind: input, shape index: {}]   ;;  %s805_s3 = inlined_call_operand.vmem [shape: f32[64,16], index: 3, kind: input, shape index: {}]   ;;  %s806_s4 = inlined_call_operand.vmem [shape: f32[1,16], index: 4, kind: input, shape index: {}]   ;;  %s807_s5 = inlined_call_operand.hbm [shape: f32[16,16], index: 5, kind: output, shape index: {}]  }
   0x1   :  { %12 = vsyncpa [#allocation3 + $0x1], 0  ;;  %s665_s18 = smov 0   ;;  %s667_s19 = smov 0  }
   0x2   :  { %s669_s20 = smov 0   ;;  %s671_s21 = smov 0  }
   0x3 LB: > { %s686_s22 = sadd.s32 4294967295, %s630_s21   ;;  %s471_s23 = sadd.s32 4294967294, %s630_s21   ;;  %s630_s21 = sphi %s671_s21, %s813_s21   ;;  %s626_s20 = sphi %s669_s20, %s812_s20   ;;  %s622_s19 = sphi %s667_s19, %s811_s19   ;;  %s618_s18 = sphi %s665_s18, %s810_s18  }
   0x4   : > { %s690_s24 = sadd.s32 1, %s630_s21   ;;  %s135_s25 = sadd.s32 1, %s626_s20 }
   0x5   : > { %s132_s26 = ssub.s32 %s630_s21, %s690_s24  ;;  %p145_p0 = scmp.ne.s32.totalorder %s626_s20, %s622_s19 }
   0x6   : > { %p133_p1 = scmp.eq.s32.totalorder %s132_s26, 0  ;;  %p146_p2 = scmp.eq.s32.totalorder %s686_s22, 1 }
   0x7   : > { %p151_p3 = scmp.ne.s32.totalorder %s622_s19, %s618_s18  ;;  %p152_p4 = scmp.eq.s32.totalorder %s471_s23, 1 }
   0x8   : > { %s701_s27 = scalar_select %p133_p1, %s626_s20, %s135_s25  }
   0x9   : > { %p703_p5 = por %p146_p2, %p145_p0  ;;  %p707_p6 = por %p152_p4, %p151_p3 }
   0xa   : > { %p474_p7 = scmp.ge.s32.totalorder %s630_s21, 1  ;;  %p189_p8 = scmp.lt.s32.totalorder %s630_s21, 3 }
   0xc   : > { %p190_p9 = pnand %p474_p7, %p189_p8 }
   0xd   : > { %p216_p10 = scmp.lt.s32.totalorder (!%p190_p9), %s686_s22, 1  ;;  %s213_s26 = sand.u32 (!%p190_p9), 1, %s622_s19  }
   0xe   : > { %193 = sbr.rel (%p190_p9) target bundleno = 433 (0x1b1), region = 40  ;;  %s475_s30 = sshll.u32 (!%p190_p9), %s213_s26, 3 }
   0xf   : > { %s482_s8 = sshll.u32 (!%p190_p9), %s686_s22, 7  ;;  %s215_s9 = scalar_lea.vmem (!%p190_p9), [#allocation2], %s475_s30 }
  0x10   : > { %s412_s10 = sshll.u32 (!%p190_p9), %s215_s9, 4  ;;  %s767_s13 = scalar_lea.hbm (!%p190_p9), %s807_s5, %s482_s8  ;;  %s413_s10 = int_to_ptr.vmem [resolvable:$true] %s412_s10 }
  0x11   : > { %s399_s14 = scalar_lea.sflag (!%p190_p9), [#allocation3], %s213_s26  ;;  %s570_s15 = scalar_lea.vmem (!%p190_p9), %s413_s10, 128 }
  0x12   : > { %p571_p11 = scmp.ne.s32.totalorder (!%p190_p9), %s413_s10, %s570_s15 }
  0x13   : > { %v224_v0 = vld [vmem:[%s803_s1 + $0x18] sm:$0xff]  ;;  %v632_v1 = vmov 0.0   ;;  %v223_v2 = vld [vmem:[%s803_s1 + $0x10] sm:$0xff]  ;;  %vm633_vm0 = vmmov 0   ;;  %s217_s11 = scalar_select %p216_p10, %s686_s22, 1  ;;  %v222_v5 = vld [vmem:[%s803_s1 + $0x8] sm:$0xff] }
  0x14   : > { %499 = vmatprep.subr.mxu0 %v632_v1  ;;  %507 = vmatprep.mubr.msk.f32.mxu0 %vm633_vm0, %v632_v1  ;;  %v314_v3 = vld [vmem:[%s805_s3 + $0x38] sm:$0xff]  ;;  %v313_v4 = vld [vmem:[%s805_s3 + $0x30] sm:$0xff]  ;;  %v312_v6 = vld [vmem:[%s805_s3 + $0x28] sm:$0xff]  ;;  %vm232_vm1 = vcmask 261120   ;;  %vm322_vm2 = vcmask 523264   ;;  %vm396_vm3 = vcmask 130048   ;;  %p572_p12 = pnand %p571_p11, %p703_p5 }
  0x15   : > { %500 = vmatpush3.msra.mxu0 %v224_v0  ;;  %510 = vmatprep.subr.mxu1 %v632_v1  ;;  %s476_s16 = sshll.u32 %s217_s11, 3  ;;  %v221_v7 = vld [vmem:[%s803_s1] sm:$0xff]  ;;  %v310_v10 = vld [vmem:[%s805_s3 + $0x18] sm:$0xff]  ;;  %v309_v11 = vld [vmem:[%s805_s3 + $0x10] sm:$0xff]  ;;  %s634_s22 = smov [#allocation2]  }
  0x16   : > { %501 = vmatprep.subr.mxu0 %v632_v1  ;;  %511 = vmatpush3.msra.mxu1 %v314_v3  ;;  %s219_s7 = scalar_lea.vmem %s802_s0, %s476_s16  ;;  %v311_v9 = vld [vmem:[%s805_s3 + $0x20] sm:$0xff]  ;;  %v308_v12 = vld [vmem:[%s805_s3 + $0x8] sm:$0xff]  ;;  %p573_p13 = pneg %p572_p12 }
  0x17   : > { %502 = vmatpush3.msra.mxu0 %v223_v2  ;;  %512 = vmatprep.subr.mxu1 %v632_v1  ;;  %v220_v8 = vld [vmem:[%s219_s7] sm:$0xff]  ;;  %s574_s16 = sshll.u32 %s634_s22, 4  ;;  %s575_s16 = int_to_ptr.vmem [resolvable:$false] %s574_s16 }
  0x18   : > { %503 = vmatprep.subr.mxu0 %v632_v1  ;;  %513 = vmatpush3.msra.mxu1 %v313_v4  ;;  %v307_v13 = vld [vmem:[%s805_s3] sm:$0xff]  ;;  %s576_s17 = scalar_lea.vmem %s575_s16, 256  ;;  %p577_p0 = scmp.lt.s32.totalorder %s413_s10, %s575_s16 }
  0x19   : > { %504 = vmatpush3.msra.mxu0 %v222_v5  ;;  %514 = vmatprep.subr.mxu1 %v632_v1  ;;  %v477_v14 = vld [vmem:[%s804_s2] ss:$0 sm:$0xff]  ;;  %p578_p1 = scmp.lt.s32.totalorder %s576_s17, %s570_s15 }
  0x1a   : > { %505 = vmatprep.subr.mxu0 %v632_v1  ;;  %515 = vmatpush3.msra.mxu1 %v312_v6  ;;  %v479_v19 = vld [vmem:[%s806_s4] ss:$0 sm:$0xff] }
  0x1b   : > { %506 = vmatpush3.msra.mxu0 %v221_v7  ;;  %516 = vmatprep.subr.mxu1 %v632_v1  ;;  %p579_p2 = por %p578_p1, %p577_p0 }
  0x1c   : > { %508 = vmatmul.mubr.msk.f32.vlgmr.msra.gmra.mxu0 %vm232_vm1, %v220_v8  ;;  %517 = vmatpush3.msra.mxu1 %v311_v9 }
  0x1d   : > { %518 = vmatprep.subr.mxu1 %v632_v1  ;;  %526 = vmatprep.mubr.msk.f32.mxu1 %vm633_vm0, %v632_v1  ;;  %p580_p3 = pnand %p579_p2, %p573_p13 }
  0x1e   : > { %519 = vmatpush3.msra.mxu1 %v310_v10 }
  0x1f   : > { %520 = vmatprep.subr.mxu1 %v632_v1 }
  0x20   : > { %521 = vmatpush3.msra.mxu1 %v309_v11 }
  0x21   : > { %522 = vmatprep.subr.mxu1 %v632_v1 }
  0x22   : > { %523 = vmatpush3.msra.mxu1 %v308_v12 }
  0x23   : > { %524 = vmatprep.subr.mxu1 %v632_v1 }
  0x24   : > { %525 = vmatpush3.msra.mxu1 %v307_v13 }
  0xdc   : > { %v302_v15 = vpop.f32.mrf.mxu0 }
  0xdd   : > { %v303_v16 = vadd.f32 %v477_v14, %v302_v15 }
  0xde   : > { %v509_v17 = vpop.f32.mrf.mxu0 }
  0xdf   : > { %v306_v18 = vmax.f32 %v303_v16, 0.0 }
  0xe1   : > { %527 = vmatmul.mubr.msk.f32.vlgmr.msra.gmra.mxu1 %vm322_vm2, %v306_v18 }
 0x1a1   : > { %v392_v20 = vpop.f32.mrf.mxu1 }
 0x1a2   : > { %v393_v21 = vadd.f32 %v479_v19, %v392_v20 }
 0x1a3   : > { %v528_v22 = vpop.f32.mrf.mxu1 }
 0x1a4   : > { %397 = vst.msk [vmem:[%s215_s9] sm:$0xff] %vm396_vm3, %v393_v21 }
 0x1a5   : > { %583 = shalt.err (!%p580_p3)
}
 0x1a6   : > { %s584_s23 = scalar_lea.hbm %s767_s13, 128  ;;  %s588_s30 = scalar_lea.hbm %s807_s5, 256 }
 0x1a7   : > { %p585_p4 = scmp.ne.s32.totalorder %s767_s13, %s584_s23  ;;  %p589_p9 = scmp.lt.s32.totalorder %s767_s13, %s807_s5 }
 0x1a8   : > { %p590_p10 = scmp.lt.s32.totalorder %s588_s30, %s584_s23 }
 0x1a9   : > { %p586_p7 = pnand %p585_p4, %p703_p5 }
 0x1aa   : > { %p591_p11 = por %p590_p10, %p589_p9 }
 0x1ab   : > { %p587_p8 = pneg %p586_p7 }
 0x1ad   : > { %p592_p12 = pnand %p591_p11, %p587_p8 }
 0x1af   : > { %595 = shalt.err (!%p592_p12)
}
 0x1b0   : > { %529 = dma.vmem_to_hbm [thread:$0]  (%p703_p5), %s413_s10, 128, %s767_s13, %s399_s14  }
 0x1b1 PF: > { %p535_p13 = scmp.ge.s32.totalorder %s630_s21, 2  ;;  %s424_s8 = sand.u32 1, %s618_s18  }
 0x1b2   : > { %s425_s9 = scalar_lea.sflag [#allocation3], %s424_s8 }
 0x1b3   : > { %p532_p0 = pnand %p535_p13, %p707_p6 }
 0x1b5   : > { %p533_p1 = pneg %p532_p0 }
 0x1b7   : > { %613 = dma.done.wait (%p533_p1), %s425_s9, 128  }
 0x1b8   : > { %615 = vsyncadd (%p533_p1), %s425_s9, 4294967168  ;;  %p15_p2 = scmp.ge.s32.totalorder %s690_s24, 4   ;;  %s810_s18 = smov %s622_s19 }
 0x1b9   : > { %s811_s19 = smov %s626_s20  ;;  %s812_s20 = smov %s701_s27 }
 0x1ba   : > { %s813_s21 = smov %s690_s24  ;;  %17 = sbr.rel (!%p15_p2) target bundleno = 3 (0x3), region = 75 }
 0x1bf   :  { %430 = vsyncpa [#allocation3], 1 }
 0x1c0   :  { %432 = vsyncpa [#allocation3 + $0x1], 1 }

</bundles_post_ra>
